<compile_context>
chip_gen: v7x
topology: tpu7x:2x2x1
jax: 0.10.0
libtpu: 0.0.40
codegen_flags: <defaults>
</compile_context>

<pallas_src>
import jax
import jax.numpy as jnp
from jax import lax
from jax.experimental import pallas as pl
from jax.experimental.pallas import tpu as pltpu


# ----------------------------- HW-aware helpers -------------------------------
def _round_up(x, m):
    return ((x + m - 1) // m) * m


def _vmem_capacity_bytes():
    """Physical VMEM per TensorCore; conservative 64 MiB (v7x) if unknown."""
    try:
        info = pltpu.get_tpu_info()
        cap = getattr(info, "vmem_capacity_bytes", None)
        if cap:
            return int(cap)
    except Exception:
        pass
    return 64 << 20


_VMEM_CAP = _vmem_capacity_bytes()
# 512-row tiles on 128 MiB parts (v5e / v6e), 256 on 64 MiB parts (v7x).
_ROW_TILE_CAP = 512 if _VMEM_CAP >= (100 << 20) else 256
_KEY_TILE_CAP = 512 if _VMEM_CAP >= (100 << 20) else 256


def _row_tile(n, cap=_ROW_TILE_CAP):
    """Row (query) tile: multiple of 8, capped, and yielding >= 2 grid steps so
    the 'parallel' axis can be sharded across v7x's two TensorCores."""
    if n <= 8:
        return n
    return min(cap, _round_up(pl.cdiv(n, 2), 8), _round_up(n, 8))


def _key_tile(n, cap=_KEY_TILE_CAP):
    """Key tile: a lane-aligned (multiple of 128) divisor of N, else the whole
    key axis (small graphs) stays in one tile."""
    t = min(cap, n) - (min(cap, n) % 128)
    while t >= 128:
        if n % t == 0:
            return t
        t -= 128
    return n


def _padded_bytes(shape, dtype):
    """VMEM footprint of one buffer: last dim padded to 128 lanes, second-to-last
    padded to the dtype's sublane quantum."""
    item = jnp.dtype(dtype).itemsize
    sub = {4: 8, 2: 16, 1: 32}.get(item, 8)
    dims = list(shape)
    dims[-1] = _round_up(dims[-1], 128)
    if len(dims) >= 2:
        dims[-2] = _round_up(dims[-2], sub)
    n = item
    for d in dims:
        n *= d
    return n


def _compiler_params(step_bytes, semantics):
    hi = max(32 << 20, min(_VMEM_CAP - (8 << 20), 100 << 20))
    limit = int(min(max(int(step_bytes) + (8 << 20), 32 << 20), hi))
    return pltpu.CompilerParams(dimension_semantics=semantics,
                                vmem_limit_bytes=limit)


# ----------------------------- Pallas kernels --------------------------------
def _make_proj_kernel(n_heads, f_out):
    H, F = n_heads, f_out

    def kernel(x_ref, w_ref, wa_ref, h_ref, f1_ref, f2_ref):
        # x:[TM, Fin] f32, w:[Fin, H*F] bf16, wa:[Fin, 2H] bf16 (= [W@a1 | W@a2]).
        # Outputs: h:[TM, H*F] bf16 (lane-dense), f1/f2:[TM, H] f32 per-node
        # attention scalars (a1/a2 folded into the projection matmul).
        xb = x_ref[...].astype(jnp.bfloat16)
        h = jnp.dot(xb, w_ref[...], preferred_element_type=jnp.float32)
        f = jnp.dot(xb, wa_ref[...], preferred_element_type=jnp.float32)
        h_ref[...] = h.astype(jnp.bfloat16)
        f1_ref[...] = f[:, :H]
        f2_ref[...] = f[:, H:]

    return kernel


def _make_attn_kernel(alpha, n_heads, f_out, apply_elu, apply_log_softmax,
                      exact_recip):
    H, F = n_heads, f_out

    def kernel(adj_ref, hk_ref, f1_ref, f2t_ref, out_ref, m_sc, l_sc, acc_sc):
        # adj:[TQ, TK] int8, hk:[TK, H*F] bf16 (key tile), f1:[TQ, H] f32,
        # f2t:[H, TK] f32, out:[TQ, H*F] f32.
        # Flash-style online softmax over key tiles; per-head running stats m/l
        # and the f32 accumulator live in VMEM scratch (init/finalize via pl.when).
        k_idx = pl.program_id(1)

        @pl.when(k_idx == 0)
        def _():
            m_sc[...] = jnp.full(m_sc.shape, -jnp.inf, m_sc.dtype)
            l_sc[...] = jnp.zeros(l_sc.shape, l_sc.dtype)
            acc_sc[...] = jnp.zeros(acc_sc.shape, acc_sc.dtype)

        neighbor = adj_ref[...] > 0                       # int8 compare, no upcast
        hk_all = hk_ref[...]                              # [TK, H*F] bf16
        f1_all = f1_ref[...]                              # [TQ, H]  f32
        f2t_all = f2t_ref[...]                            # [H, TK]  f32

        # Static loop over heads (H is tiny here); e/p temporaries are consumed
        # per head before the next iteration.
        # TODO(synk): for large H, move heads onto a grid axis instead.
        for h in range(H):
            # e_ij = LeakyReLU(f1_i + f2_j): pure VPU broadcast-add, the a1/a2
            # dot products were folded into the projection kernel.
            e = f1_all[:, h:h + 1] + f2t_all[h:h + 1, :]  # [TQ, TK] f32
            e = jnp.where(e > 0, e, alpha * e)            # LeakyReLU(alpha)
            e = jnp.where(neighbor, e, -1.0e12)           # same mask as torch

            m_prev = m_sc[h]                              # [TQ, 1]
            m_new = jnp.maximum(m_prev, jnp.max(e, axis=-1, keepdims=True))
            corr = jnp.exp(m_prev - m_new)
            p = jnp.exp(e - m_new)                        # f32 (v5e-safe EUP path)
            l_sc[h] = corr * l_sc[h] + jnp.sum(p, axis=-1, keepdims=True)
            hk = hk_all[:, h * F:(h + 1) * F]             # [TK, F] bf16
            acc_sc[h] = corr * acc_sc[h] + jnp.dot(
                p.astype(jnp.bfloat16), hk, preferred_element_type=jnp.float32)
            m_sc[h] = m_new

        @pl.when(k_idx == pl.num_programs(1) - 1)
        def _():
            # TODO(synk): F.dropout(attention) is identity in eval mode; training RNG omitted.
            outs = []
            for h in range(H):
                s = l_sc[h]
                inv = (1.0 / s) if exact_recip else pl.reciprocal(s, approx=True)
                outs.append(acc_sc[h] * inv)
            out = outs[0] if H == 1 else jnp.concatenate(outs, axis=-1)
            if apply_elu:                                 # F.elu (alpha = 1.0)
                out = jnp.where(out > 0, out, jnp.exp(out) - 1.0)
            if apply_log_softmax:                         # log_softmax(dim=-1)
                mm = jnp.max(out, axis=-1, keepdims=True)
                z = out - mm
                out = z - jnp.log(jnp.sum(jnp.exp(z), axis=-1, keepdims=True))
            out_ref[...] = out.astype(out_ref.dtype)

    return kernel


# ------------------------------ layer wrapper ---------------------------------
def gal_layer(x, adj_i8, W_bf, Wa_bf, *, n_heads, f_out, alpha,
              apply_elu, apply_log_softmax=False, exact_recip=False):
    """Fused multi-head GraphAttentionLayer (eval mode).

    x:[N, Fin] f32, adj_i8:[N, N] int8 edge mask, W_bf:[Fin, H*F] bf16 (all head
    W's packed column-wise), Wa_bf:[Fin, 2H] bf16 (= [W@a1 | W@a2] per head).
    Returns [N, H*F] f32.
    """
    N, Fin = x.shape
    H, F = n_heads, f_out
    x = x.astype(jnp.float32)

    # ---- 1) projection: h (bf16, lane-dense) + f1/f2 in one row-tiled pass ----
    TM = _row_tile(N)
    proj_step = (2 * (_padded_bytes((TM, Fin), jnp.float32)
                      + _padded_bytes((Fin, H * F), jnp.bfloat16)
                      + _padded_bytes((Fin, 2 * H), jnp.bfloat16)
                      + _padded_bytes((TM, H * F), jnp.bfloat16)
                      + 2 * _padded_bytes((TM, H), jnp.float32))
                 + 2 * _padded_bytes((TM, H * F), jnp.float32))
    h_bf, f1, f2 = pl.pallas_call(
        _make_proj_kernel(H, F),
        out_shape=(jax.ShapeDtypeStruct((N, H * F), jnp.bfloat16),
                   jax.ShapeDtypeStruct((N, H), jnp.float32),
                   jax.ShapeDtypeStruct((N, H), jnp.float32)),
        grid=(pl.cdiv(N, TM),),
        in_specs=[pl.BlockSpec((TM, Fin), lambda r: (r, 0)),
                  pl.BlockSpec((Fin, H * F), lambda r: (0, 0)),   # resident weights
                  pl.BlockSpec((Fin, 2 * H), lambda r: (0, 0))],
        out_specs=(pl.BlockSpec((TM, H * F), lambda r: (r, 0)),
                   pl.BlockSpec((TM, H), lambda r: (r, 0)),
                   pl.BlockSpec((TM, H), lambda r: (r, 0))),
        compiler_params=_compiler_params(proj_step, ("parallel",)),
        cost_estimate=pl.CostEstimate(
            flops=int(2 * N * Fin * (H * F + 2 * H)),
            transcendentals=0,
            bytes_accessed=int(4 * N * Fin + 2 * Fin * (H * F + 2 * H)
                               + 2 * N * H * F + 8 * N * H)),
    )(x, W_bf, Wa_bf)

    # f2 is consumed as a [1, TK] lane vector per head; give it a head-major
    # layout once in the wrapper (tiny [N, H] -> [H, N] transpose, plain XLA).
    f2t = jnp.transpose(f2)

    # ---- 2) flash-style attention over (query row tiles, key tiles) ----
    TQ = _row_tile(N)
    TK = _key_tile(N)
    attn_step = (2 * (_padded_bytes((TQ, TK), jnp.int8)
                      + _padded_bytes((TK, H * F), jnp.bfloat16)
                      + _padded_bytes((TQ, H), jnp.float32)
                      + _padded_bytes((H, TK), jnp.float32)
                      + _padded_bytes((TQ, H * F), jnp.float32))
                 + 2 * _padded_bytes((H, TQ, 1), jnp.float32)
                 + _padded_bytes((H, TQ, F), jnp.float32)
                 + 4 * _padded_bytes((TQ, TK), jnp.float32))   # e/p working set
    out = pl.pallas_call(
        _make_attn_kernel(float(alpha), H, F, apply_elu, apply_log_softmax,
                          exact_recip),
        out_shape=jax.ShapeDtypeStruct((N, H * F), jnp.float32),
        grid=(pl.cdiv(N, TQ), N // TK),
        in_specs=[pl.BlockSpec((TQ, TK), lambda q, k: (q, k)),      # adj int8 tile
                  pl.BlockSpec((TK, H * F), lambda q, k: (k, 0)),   # h key tile (bf16)
                  pl.BlockSpec((TQ, H), lambda q, k: (q, 0)),       # f1 query scalars
                  pl.BlockSpec((H, TK), lambda q, k: (0, k))],      # f2 key scalars
        out_specs=pl.BlockSpec((TQ, H * F), lambda q, k: (q, 0)),   # lane-dense store
        scratch_shapes=[pltpu.VMEM((H, TQ, 1), jnp.float32),        # running max
                        pltpu.VMEM((H, TQ, 1), jnp.float32),        # running sum
                        pltpu.VMEM((H, TQ, F), jnp.float32)],       # accumulator
        compiler_params=_compiler_params(attn_step, ("parallel", "arbitrary")),
        cost_estimate=pl.CostEstimate(
            flops=int(H * (2 * N * N * F + 8 * N * N)),
            transcendentals=int(H * N * N + N * H * F),
            bytes_accessed=int(N * N + 2 * N * H * F + 8 * N * H + 4 * N * H * F)),
    )(adj_i8, h_bf, f1, f2t)
    return out


# ------------------------------- JAX glue -------------------------------------
def xavier_uniform(key, shape, gain):
    fan_in, fan_out = shape[-2], shape[-1]
    limit = gain * (6.0 / (fan_in + fan_out)) ** 0.5
    return jax.random.uniform(key, shape, jnp.float32, -limit, limit)


def init_gat_params(key, n_feat, n_hid, n_class, n_heads):
    gain = 1.414
    keys = jax.random.split(key, 2 * n_heads + 2)
    atts = []
    for i in range(n_heads):
        W = xavier_uniform(keys[2 * i], (n_feat, n_hid), gain)   # == W[0] of (1,Fin,Fout)
        a = xavier_uniform(keys[2 * i + 1], (2 * n_hid, 1), gain)
        atts.append((W, a))
    W_out = xavier_uniform(keys[-2], (n_hid * n_heads, n_class), gain)
    a_out = xavier_uniform(keys[-1], (2 * n_class, 1), gain)
    return atts, W_out, a_out


def _pack_head_params(heads):
    """[(W:[Fin,F], a:[2F,1]), ...] -> W:[Fin, H*F] bf16, Wa:[Fin, 2H] bf16.

    a1/a2 are folded into the projection: Wa = [W@a1 (per head) | W@a2 (per head)],
    so x @ Wa yields the per-node attention scalars f1/f2 for all heads at once.
    """
    F = heads[0][0].shape[1]
    W_packed = jnp.concatenate([w for (w, _) in heads], axis=1)           # [Fin, H*F]
    wa1 = jnp.concatenate([w @ a[:F] for (w, a) in heads], axis=1)        # [Fin, H]
    wa2 = jnp.concatenate([w @ a[F:] for (w, a) in heads], axis=1)        # [Fin, H]
    Wa_packed = jnp.concatenate([wa1, wa2], axis=1)                       # [Fin, 2H]
    return W_packed.astype(jnp.bfloat16), Wa_packed.astype(jnp.bfloat16)


def gat_forward(x, adj, params, *, alpha):
    """x:[1, N, n_feat] (Batch=1), adj:[N, N] -> log-probs [1, N, n_class] (eval)."""
    atts, W_out, a_out = params
    x2 = x[0].astype(jnp.float32)                       # squeeze Batch = 1
    adj_i8 = (adj > 0).astype(jnp.int8)                 # edge mask, read as int8
    H = len(atts)
    F_hid = atts[0][0].shape[1]
    n_class = W_out.shape[1]

    W_p, Wa_p = _pack_head_params(atts)
    h = gal_layer(x2, adj_i8, W_p, Wa_p, n_heads=H, f_out=F_hid, alpha=alpha,
                  apply_elu=True)                       # [N, H*F_hid]
    # TODO(synk): F.dropout is identity in eval mode; training-mode dropout omitted.
    W_po, Wa_po = _pack_head_params([(W_out, a_out)])
    out = gal_layer(h, adj_i8, W_po, Wa_po, n_heads=1, f_out=n_class, alpha=alpha,
                    apply_elu=True, apply_log_softmax=True, exact_recip=True)
    return out[None]                                    # [1, N, n_class]


# --------------------------- pure-JAX reference --------------------------------
def _gal_ref(x, adj, W, a, alpha):
    Fo = W.shape[1]
    xb = x.astype(jnp.bfloat16)
    h = jnp.dot(xb, W.astype(jnp.bfloat16), preferred_element_type=jnp.float32)
    wa1 = (W @ a[:Fo]).astype(jnp.bfloat16)
    wa2 = (W @ a[Fo:]).astype(jnp.bfloat16)
    f1 = jnp.dot(xb, wa1, preferred_element_type=jnp.float32)
    f2 = jnp.dot(xb, wa2, preferred_element_type=jnp.float32)
    e = f1 + f2.T
    e = jnp.where(e > 0, e, alpha * e)
    e = jnp.where(adj > 0, e, -1.0e12)
    m = jnp.max(e, axis=-1, keepdims=True)
    p = jnp.exp(e - m)
    s = jnp.sum(p, axis=-1, keepdims=True)
    return jnp.dot(p.astype(jnp.bfloat16), h.astype(jnp.bfloat16),
                   preferred_element_type=jnp.float32) / s


def gat_reference(x, adj, params, *, alpha):
    atts, W_out, a_out = params
    x2 = x[0]
    heads = [jax.nn.elu(_gal_ref(x2, adj, W, a, alpha)) for (W, a) in atts]
    h = jnp.concatenate(heads, axis=1)
    out = jax.nn.elu(_gal_ref(h, adj, W_out, a_out, alpha))
    return jax.nn.log_softmax(out, axis=-1)[None]


# ---------------------------------- main ---------------------------------------
if __name__ == "__main__":
    key = jax.random.PRNGKey(0)
    N, n_feat, n_hid, n_class, n_heads = 32, 16, 8, 4, 2
    alpha, dropout = 0.2, 0.6          # dropout unused at inference (eval mode)

    k_x, k_adj, k_p = jax.random.split(key, 3)
    x = jax.random.normal(k_x, (1, N, n_feat), jnp.float32)       # [Batch=1, N, n_feat]
    adj = (jax.random.uniform(k_adj, (N, N)) > 0.5).astype(jnp.float32)
    adj = jnp.maximum(adj, jnp.eye(N, dtype=jnp.float32))         # self loops

    params = init_gat_params(k_p, n_feat, n_hid, n_class, n_heads)

    out = jax.block_until_ready(gat_forward(x, adj, params, alpha=alpha))
    ref = gat_reference(x, adj, params, alpha=alpha)

    assert out.shape == (1, N, n_class), out.shape
    assert bool(jnp.all(jnp.isfinite(out)))
    # Tolerance covers the hidden layer's approximate EUP reciprocal and the
    # online-vs-direct softmax reduction order; both sides use the same bf16
    # MXU operand casts and folded a1/a2 projection math.
    assert jnp.allclose(out, ref, atol=2e-2, rtol=2e-2), \
        f"max abs diff = {float(jnp.max(jnp.abs(out - ref)))}"

    print("KERNEL_OK")
</pallas_src>

<mosaic_0001>
module attributes {stable_mosaic.version = 11 : i64} {
  func.func @kernel(%arg0: i32, %arg1: memref<16x16xf32, #tpu.memory_space<vmem>>, %arg2: memref<16x16xbf16, #tpu.memory_space<vmem>>, %arg3: memref<16x4xbf16, #tpu.memory_space<vmem>>, %arg4: memref<16x16xbf16, #tpu.memory_space<vmem>>, %arg5: memref<16x2xf32, #tpu.memory_space<vmem>>, %arg6: memref<16x2xf32, #tpu.memory_space<vmem>>) attributes {dimension_semantics = [#tpu.dimension_semantics<parallel>], iteration_bounds = array<i64: 2>, scalar_prefetch = 0 : i64, scratch_operands = 0 : i64, tpu.core_type = #tpu.core_type<tc>, window_params = [{transform_indices = @transform_0, window_bounds = array<i64: 16, 16>}, {pipeline_mode = #tpu.pipeline_mode<synchronous>, transform_indices = @transform_1, window_bounds = array<i64: 16, 16>}, {pipeline_mode = #tpu.pipeline_mode<synchronous>, transform_indices = @transform_2, window_bounds = array<i64: 16, 4>}, {transform_indices = @transform_3, window_bounds = array<i64: 16, 16>}, {transform_indices = @transform_4, window_bounds = array<i64: 16, 2>}, {transform_indices = @transform_5, window_bounds = array<i64: 16, 2>}]} {
    %c0 = arith.constant 0 : index
    %c0_0 = arith.constant 0 : index
    %0 = vector.load %arg1[%c0, %c0_0] : memref<16x16xf32, #tpu.memory_space<vmem>>, vector<16x16xf32>
    %1 = arith.truncf %0 : vector<16x16xf32> to vector<16x16xbf16>
    %c0_1 = arith.constant 0 : index
    %c0_2 = arith.constant 0 : index
    %2 = vector.load %arg2[%c0_1, %c0_2] : memref<16x16xbf16, #tpu.memory_space<vmem>>, vector<16x16xbf16>
    %cst = arith.constant dense<0.000000e+00> : vector<16x16xf32>
    %3 = tpu.matmul %1, %2, %cst {dimension_numbers = #tpu.dot_dimension_numbers<[1], [0], [0], [1], [0, 0, 1, 1], [], []>} : vector<16x16xbf16>, vector<16x16xbf16>, vector<16x16xf32> -> vector<16x16xf32>
    %c0_3 = arith.constant 0 : index
    %c0_4 = arith.constant 0 : index
    %4 = vector.load %arg3[%c0_3, %c0_4] : memref<16x4xbf16, #tpu.memory_space<vmem>>, vector<16x4xbf16>
    %cst_5 = arith.constant dense<0.000000e+00> : vector<16x4xf32>
    %5 = tpu.matmul %1, %4, %cst_5 {dimension_numbers = #tpu.dot_dimension_numbers<[1], [0], [0], [1], [0, 0, 1, 1], [], []>} : vector<16x16xbf16>, vector<16x4xbf16>, vector<16x4xf32> -> vector<16x4xf32>
    %6 = arith.truncf %3 : vector<16x16xf32> to vector<16x16xbf16>
    %c0_6 = arith.constant 0 : index
    %c0_7 = arith.constant 0 : index
    %7 = vector.load %arg4[%c0_6, %c0_7] : memref<16x16xbf16, #tpu.memory_space<vmem>>, vector<16x16xbf16>
    tpu.vector_store %arg4[%c0_6, %c0_7], %6 {strides = array<i32>} : memref<16x16xbf16, #tpu.memory_space<vmem>>, vector<16x16xbf16>,
    %8 = vector.extract_strided_slice %5 {offsets = [0, 0], sizes = [16, 2], strides = [1, 1]} : vector<16x4xf32> to vector<16x2xf32>
    %c0_8 = arith.constant 0 : index
    %c0_9 = arith.constant 0 : index
    %9 = vector.load %arg5[%c0_8, %c0_9] : memref<16x2xf32, #tpu.memory_space<vmem>>, vector<16x2xf32>
    tpu.vector_store %arg5[%c0_8, %c0_9], %8 {strides = array<i32>} : memref<16x2xf32, #tpu.memory_space<vmem>>, vector<16x2xf32>,
    %10 = vector.extract_strided_slice %5 {offsets = [0, 2], sizes = [16, 2], strides = [1, 1]} : vector<16x4xf32> to vector<16x2xf32>
    %c0_10 = arith.constant 0 : index
    %c0_11 = arith.constant 0 : index
    %11 = vector.load %arg6[%c0_10, %c0_11] : memref<16x2xf32, #tpu.memory_space<vmem>>, vector<16x2xf32>
    tpu.vector_store %arg6[%c0_10, %c0_11], %10 {strides = array<i32>} : memref<16x2xf32, #tpu.memory_space<vmem>>, vector<16x2xf32>,
    return
  }
  func.func @transform_0(%arg0: i32) -> (i32, i32) {
    %c0_i32 = arith.constant 0 : i32
    %c0_i32_0 = arith.constant 0 : i32
    return %arg0, %c0_i32 : i32, i32
  }
  func.func @transform_1(%arg0: i32) -> (i32, i32) {
    %c0_i32 = arith.constant 0 : i32
    %c0_i32_0 = arith.constant 0 : i32
    %c0_i32_1 = arith.constant 0 : i32
    return %c0_i32, %c0_i32_0 : i32, i32
  }
  func.func @transform_2(%arg0: i32) -> (i32, i32) {
    %c0_i32 = arith.constant 0 : i32
    %c0_i32_0 = arith.constant 0 : i32
    %c0_i32_1 = arith.constant 0 : i32
    return %c0_i32, %c0_i32_0 : i32, i32
  }
  func.func @transform_3(%arg0: i32) -> (i32, i32) {
    %c0_i32 = arith.constant 0 : i32
    %c0_i32_0 = arith.constant 0 : i32
    return %arg0, %c0_i32 : i32, i32
  }
  func.func @transform_4(%arg0: i32) -> (i32, i32) {
    %c0_i32 = arith.constant 0 : i32
    %c0_i32_0 = arith.constant 0 : i32
    return %arg0, %c0_i32 : i32, i32
  }
  func.func @transform_5(%arg0: i32) -> (i32, i32) {
    %c0_i32 = arith.constant 0 : i32
    %c0_i32_0 = arith.constant 0 : i32
    return %arg0, %c0_i32 : i32, i32
  }
}

</mosaic_0001>

<bundles_post_ra>
// kernel: tpu_custom_call.1
= control target key start
LH: loop header
LB: loop body
LE: loop exit
PB: predicated region body
PF: predicated region fallthrough
CT: control target
= control target key end

     0   :  { %s602_s18 = smov 0   ;;  %s640_s0 = inlined_call_operand.vmem [shape: f32[32,16], index: 0, kind: input, shape index: {}]   ;;  %s641_s1 = inlined_call_operand.vmem [shape: bf16[16,16], index: 1, kind: input, shape index: {}]   ;;  %s642_s2 = inlined_call_operand.vmem [shape: bf16[16,4], index: 2, kind: input, shape index: {}]   ;;  %s643_s3 = inlined_call_operand.vmem [shape: bf16[32,16], index: 3, kind: output, shape index: {0}]   ;;  %s644_s4 = inlined_call_operand.vmem [shape: f32[32,2], index: 4, kind: output, shape index: {1}]   ;;  %s645_s5 = inlined_call_operand.vmem [shape: f32[32,2], index: 5, kind: output, shape index: {2}]  }
   0x1 LB: > { %s509_s19 = sadd.s32 4294967295, %s567_s18   ;;  %p513_p0 = scmp.ge.s32.totalorder %s567_s18, 1  ;;  %s567_s18 = sphi %s602_s18, %s16_s18  }
   0x2   : > { %p193_p1 = scmp.lt.s32.totalorder %s567_s18, 3 }
   0x4   : > { %p194_p2 = pnand %p513_p0, %p193_p1 }
   0x5   : > { %v559_v0 = vld [vmem:[%s642_s2] sm:$0xff] (!%p194_p2)   ;;  %v569_v1 = vmov (!%p194_p2), 0.0   ;;  %s514_s22 = sshll.u32 (!%p194_p2), %s509_s19, 1  ;;  %vm570_vm0 = vmmov (!%p194_p2), 0   ;;  %vm267_vm1 = vcmask (!%p194_p2), 130048   ;;  %vm372_vm2 = vcmask (!%p194_p2), 15360  }
   0x6   : > { %197 = sbr.rel (%p194_p2) target bundleno = 351 (0x15f), region = 32  ;;  %542 = vmatprep.subr.bf16.mxu1 (!%p194_p2), %v569_v1  ;;  %536 = vmatprep.subr.bf16.mxu0 (!%p194_p2), %v569_v1  ;;  %v560_v2 = vld [vmem:[%s641_s1] sm:$0xff] (!%p194_p2)   ;;  %p232_p3 = scmp.lt.s32.totalorder (!%p194_p2), %s514_s22, 3  ;;  %vm369_vm3 = vcmask (!%p194_p2), 125952  }
   0x7   : > { %543 = vmatpush3.bf16.msra.mxu1 (!%p194_p2), %v559_v0  ;;  %544 = vmatprep.mubr.msk.bf16.mxu1 (!%p194_p2), %vm570_vm0, %v569_v1  ;;  %s571_s11 = smov (!%p194_p2), 126  }
   0x8   : > { %537 = vmatpush3.bf16.msra.mxu0 (!%p194_p2), %v560_v2  ;;  %538 = vmatprep.mubr.msk.bf16.mxu0 (!%p194_p2), %vm570_vm0, %v569_v1 }
   0xd   : > { %s647_s22 = smov (!%p232_p3, %s514_s22), 3 }
   0xe   : > { %s616_s25 = sshll.u32 %s647_s22, 3  ;;  %s517_s29 = sshll.u32 %s647_s22, 2 }
   0xf   : > { %s235_s28 = scalar_lea.vmem %s640_s0, %s616_s25  ;;  %s247_s7 = scalar_lea.vmem %s644_s4, %s616_s25 }
  0x10   : > { %v256_v3 = vld [vmem:[%s235_s28] sm:$0xff]  ;;  %v257_v4 = vld [vmem:[%s235_s28 + $0x8] sm:$0xff]  ;;  %s241_s10 = scalar_lea.vmem %s643_s3, %s517_s29  ;;  %s253_s14 = scalar_lea.vmem %s645_s5, %s616_s25 }
  0x11   : > { %v258_v5 = vpack.c.bf16 %v257_v4, %v256_v3 }
  0x13   : > { %545 = vmatmul.mubr.msk.bf16.vlgmr.msra.gmra.mrb[0].mxu1 %vm267_vm1, %v258_v5  ;;  %539 = vmatmul.mubr.msk.bf16.vlgmr.msra.gmra.mrb[0].mxu0 %vm267_vm1, %v258_v5 }
  0xe6   : > { %v354_v6 = vpop.f32.mrb[0].mxu1  ;;  %v305_v7 = vpop.f32.mrb[0].mxu0 }
  0xe7   : > { %373 = vst.msk [vmem:[%s247_s7] sm:$0xff] %vm372_vm2, %v354_v6  ;;  %377 = vrot.lane.b32.xlu0 %v354_v6, %s571_s11  ;;  %v546_v8 = vpop.f32.mrb[1].mxu1  ;;  %v530_v9 = vpack.c.bf16 %v305_v7, %v305_v7  ;;  %v540_v10 = vpop.f32.mrb[1].mxu0 }
  0xe8   : > { %v357_v11 = vpop.f32.mrb[2].mxu1  ;;  %v308_v12 = vpop.f32.mrb[2].mxu0 }
  0xe9   : > { %374 = vst.msk [vmem:[%s247_s7 + $0x8] sm:$0xff] %vm372_vm2, %v357_v11  ;;  %v547_v13 = vpop.f32.mrb[3].mxu1  ;;  %v531_v14 = vpack.c.bf16 %v308_v12, %v308_v12  ;;  %v541_v15 = vpop.f32.mrb[3].mxu0 }
  0xea   : > { %370 = vst.msk [vmem:[%s241_s10] sm:$0xf] %vm369_vm3, %v530_v9 }
  0xeb   : > { %379 = vrot.lane.b32.xlu0 %v357_v11, %s571_s11  ;;  %371 = vst.msk [vmem:[%s241_s10 + $0x4] sm:$0xf] %vm369_vm3, %v531_v14 }
 0x159   : > { %v378_v16 = vpop.permute.xlu0 %377 }
 0x15a   : > { %383 = vst.msk [vmem:[%s253_s14] sm:$0xff] %vm372_vm2, %v378_v16 }
 0x15d   : > { %v380_v17 = vpop.permute.xlu0 %379 }
 0x15e   : > { %384 = vst.msk [vmem:[%s253_s14 + $0x8] sm:$0xff] %vm372_vm2, %v380_v17 }
 0x15f PF: > { %s16_s18 = sadd.s32 1, %s567_s18  }
 0x160   : > { %p13_p4 = scmp.ge.s32.totalorder %s16_s18, 4  }
 0x162   :  { %15 = sbr.rel (!%p13_p4) target bundleno = 1 (0x1), region = 86 }

</bundles_post_ra>
